<compile_context>
chip_gen: v6e
topology: v6e:2x2x1
jax: 0.10.0
libtpu: 0.0.40
codegen_flags: <defaults>
</compile_context>

<pallas_src>
import math
import numpy as np
import jax
import jax.numpy as jnp
from jax.experimental import pallas as pl
from jax.experimental.pallas import tpu as pltpu

_VMEM_BUDGET_BYTES = 40 * 1024 * 1024   # conservative: fits v7x 64 MiB/TC


def _round_up(x, m):
    return ((x + m - 1) // m) * m


# ----------------------------------------------------------------------------
# Fused kernel: the whole Linear+ReLU chain in one launch
# ----------------------------------------------------------------------------
def _make_fused_ae_kernel(num_layers):
    def kernel(*refs):
        # refs = (x_ref, w_0, b_0, ..., w_{L-1}, b_{L-1}, o_ref)
        x_ref, o_ref = refs[0], refs[-1]
        wb = refs[1:-1]
        act = x_ref[...]                         # bf16 (TB, in0_pad)
        for l in range(num_layers):              # static unroll, L is small
            w_ref, b_ref = wb[2 * l], wb[2 * l + 1]
            # bf16 x bf16 -> f32 on the MXU; per-layer static shapes.
            y = jnp.dot(act, w_ref[...], preferred_element_type=jnp.float32)
            y = jnp.maximum(y + b_ref[...], 0.0)          # bias + ReLU in f32
            # Next layer's MXU operand in bf16; keep the final layer in f32.
            act = y.astype(jnp.bfloat16) if l + 1 < num_layers else y
        o_ref[...] = act.astype(o_ref.dtype)
    return kernel


# ----------------------------------------------------------------------------
# Parameter packing (hoisted out of the forward path, done once)
# ----------------------------------------------------------------------------
def prepare_params(layers):
    """Pad/cast parameters once at parameter-load time.

    Each weight (stored transposed, (in, out)) is zero-padded to
    (round_up(in,128), round_up(out,128)) and cast to bf16; biases to
    (1, round_up(out,128)) f32.  Zero padding guarantees padded lanes stay
    exactly 0 through every Linear+ReLU, so the final slice is exact.
    """
    padded = []
    for (w_t, b) in layers:
        din, dout = w_t.shape
        din_p, dout_p = _round_up(din, 128), _round_up(dout, 128)
        w_pad = jnp.zeros((din_p, dout_p), jnp.float32).at[:din, :dout].set(w_t)
        b_pad = jnp.zeros((1, dout_p), jnp.float32).at[0, :dout].set(b)
        padded.append((w_pad.astype(jnp.bfloat16), b_pad))
    return padded


# ----------------------------------------------------------------------------
# Forward wrapper
# ----------------------------------------------------------------------------
def autoencoder_forward_pallas(x, padded_layers, out_dim,
                               vmem_budget_bytes=_VMEM_BUDGET_BYTES):
    """x: (B, dims[0]) f32.  padded_layers: output of prepare_params."""
    B, in0 = x.shape
    L = len(padded_layers)
    in0_pad = padded_layers[0][0].shape[0]
    out_pad_w = padded_layers[-1][0].shape[1]
    max_w = max([in0_pad] + [w.shape[1] for (w, _) in padded_layers])

    # Resident (single-buffered) parameter bytes.
    w_bytes = sum(w.size * w.dtype.itemsize + b.size * b.dtype.itemsize
                  for (w, b) in padded_layers)
    # TODO(synk): if per-layer-padded weights ever exceed ~40 MiB (v7x 64 MiB
    # VMEM/TC), split the chain into two pallas_calls at the bottleneck layer
    # (activations there are tiny) instead of K-tiling the fused kernel.

    # Per-row VMEM cost: double-buffered bf16 input + f32 output tiles plus a
    # few f32 temps of the widest activation for the kernel body.
    per_row = 2 * 2 * in0_pad + 2 * 4 * out_pad_w + 3 * 4 * max_w

    # Batch tiling: sublane(16, bf16)-aligned; one tile for small batches,
    # otherwise MXU-M aligned with >=2 tiles so the "parallel" axis can shard
    # across both v7x TensorCores (each core holds its own weight copy).
    B_pad = _round_up(max(B, 16), 16)
    tb_cap = max(16, ((vmem_budget_bytes - w_bytes) // per_row // 16) * 16)
    if B_pad <= 256 and B_pad <= tb_cap:
        TB = B_pad
    else:
        TB = min(tb_cap, _round_up(pl.cdiv(B_pad, 2), 128), 1024)
        TB = max(16, (TB // 128) * 128) if TB >= 128 else 16
    B_pad = _round_up(B_pad, TB)
    grid = (B_pad // TB,)

    # Pad the input exactly once (zero rows/lanes stay zero through the chain).
    x_pad = jnp.zeros((B_pad, in0_pad), jnp.bfloat16).at[:B, :in0].set(
        x.astype(jnp.bfloat16))

    vmem_limit = int(min(max(w_bytes + per_row * TB + (8 << 20), 32 << 20),
                         96 << 20))

    def call(single_buffer_weights):
        wkw = ({"pipeline_mode": pl.Buffered(1)}
               if single_buffer_weights else {})
        in_specs = [pl.BlockSpec((TB, in0_pad), lambda i: (i, 0))]
        args = [x_pad]
        for (w, b) in padded_layers:
            # Grid-invariant (constant index_map) -> VMEM-resident weights.
            in_specs.append(pl.BlockSpec(w.shape, lambda i: (0, 0), **wkw))
            in_specs.append(pl.BlockSpec(b.shape, lambda i: (0, 0), **wkw))
            args += [w, b]
        out = pl.pallas_call(
            _make_fused_ae_kernel(L),
            grid=grid,
            out_shape=jax.ShapeDtypeStruct((B_pad, out_pad_w), jnp.float32),
            in_specs=in_specs,
            out_specs=pl.BlockSpec((TB, out_pad_w), lambda i: (i, 0)),
            compiler_params=pltpu.CompilerParams(
                dimension_semantics=("parallel",),
                vmem_limit_bytes=vmem_limit),
        )(*args)
        return jax.block_until_ready(out)

    try:
        out_full = call(True)    # single-buffered grid-invariant weights
    except Exception:
        # pl.Buffered(1) unsupported on this jax build: identical kernel with
        # default (double-buffered) weight/bias blocks.
        out_full = call(False)

    return out_full[:B, :out_dim]


# ----------------------------------------------------------------------------
# Parameter construction mirroring the PyTorch Autoencoder
# ----------------------------------------------------------------------------
def build_autoencoder_params(key, dims):
    """nn.Linear chain, xavier_uniform_ weights (stored transposed (in,out)),
    zero biases.  The encoder/decoder split around the smallest dim does not
    change forward(x) = decode(encode(x)): it is the full chain in order with
    a ReLU after every Linear."""
    layers = []
    for i in range(len(dims) - 1):
        fan_in, fan_out = dims[i], dims[i + 1]
        bound = math.sqrt(6.0 / (fan_in + fan_out))
        key, sub = jax.random.split(key)
        w_t = jax.random.uniform(sub, (fan_in, fan_out), jnp.float32,
                                 -bound, bound)
        layers.append((w_t, jnp.zeros((fan_out,), jnp.float32)))
    return layers


def autoencoder_forward_ref_f32(x, layers):
    """Plain-JAX f32 reference of the module's math."""
    for (w_t, b) in layers:
        x = jnp.maximum(jnp.dot(x, w_t) + b, 0.0)
    return x


def autoencoder_forward_ref_bf16(x, layers):
    """Plain-JAX reference of the kernel's exact math (bf16 operands, f32 acc)."""
    act = x.astype(jnp.bfloat16)
    for i, (w_t, b) in enumerate(layers):
        y = jnp.dot(act, w_t.astype(jnp.bfloat16),
                    preferred_element_type=jnp.float32) + b
        y = jnp.maximum(y, 0.0)
        act = y.astype(jnp.bfloat16) if i + 1 < len(layers) else y
    return act


# ----------------------------------------------------------------------------
# Example run
# ----------------------------------------------------------------------------
if __name__ == "__main__":
    key = jax.random.PRNGKey(0)

    # Small autoencoder consistent with the module's dims pattern
    # (encode 64 -> 32 -> 8, decode 8 -> 32 -> 64).
    dims = [64, 32, 8, 32, 64]
    batch = 2

    key, pkey, xkey = jax.random.split(key, 3)
    layers = build_autoencoder_params(pkey, dims)
    padded_layers = prepare_params(layers)       # hoisted: packed once
    x = jax.random.normal(xkey, (batch, dims[0]), jnp.float32)

    out = autoencoder_forward_pallas(x, padded_layers, dims[-1])
    out = jax.block_until_ready(out)
    assert out.shape == (batch, dims[-1])

    ref16 = autoencoder_forward_ref_bf16(x, layers)   # kernel's exact math
    ref32 = autoencoder_forward_ref_f32(x, layers)    # module's f32 math
    np.testing.assert_allclose(np.asarray(out), np.asarray(ref16),
                               rtol=1e-3, atol=1e-3)
    np.testing.assert_allclose(np.asarray(out), np.asarray(ref32),
                               rtol=3e-2, atol=3e-2)

    print("KERNEL_OK")
</pallas_src>

<mosaic_0001>
module attributes {stable_mosaic.version = 11 : i64} {
  func.func @kernel(%arg0: i32, %arg1: memref<16x128xbf16, #tpu.memory_space<vmem>>, %arg2: memref<128x128xbf16, #tpu.memory_space<vmem>>, %arg3: memref<1x128xf32, #tpu.memory_space<vmem>>, %arg4: memref<128x128xbf16, #tpu.memory_space<vmem>>, %arg5: memref<1x128xf32, #tpu.memory_space<vmem>>, %arg6: memref<128x128xbf16, #tpu.memory_space<vmem>>, %arg7: memref<1x128xf32, #tpu.memory_space<vmem>>, %arg8: memref<128x128xbf16, #tpu.memory_space<vmem>>, %arg9: memref<1x128xf32, #tpu.memory_space<vmem>>, %arg10: memref<16x128xf32, #tpu.memory_space<vmem>>) attributes {dimension_semantics = [#tpu.dimension_semantics<parallel>], iteration_bounds = array<i64: 1>, scalar_prefetch = 0 : i64, scratch_operands = 0 : i64, tpu.core_type = #tpu.core_type<tc>, window_params = [{transform_indices = @transform_0, window_bounds = array<i64: 16, 128>}, {pipeline_mode = #tpu.pipeline_mode<synchronous>, transform_indices = @transform_1, window_bounds = array<i64: 128, 128>}, {pipeline_mode = #tpu.pipeline_mode<synchronous>, transform_indices = @transform_2, window_bounds = array<i64: 1, 128>}, {pipeline_mode = #tpu.pipeline_mode<synchronous>, transform_indices = @transform_3, window_bounds = array<i64: 128, 128>}, {pipeline_mode = #tpu.pipeline_mode<synchronous>, transform_indices = @transform_4, window_bounds = array<i64: 1, 128>}, {pipeline_mode = #tpu.pipeline_mode<synchronous>, transform_indices = @transform_5, window_bounds = array<i64: 128, 128>}, {pipeline_mode = #tpu.pipeline_mode<synchronous>, transform_indices = @transform_6, window_bounds = array<i64: 1, 128>}, {pipeline_mode = #tpu.pipeline_mode<synchronous>, transform_indices = @transform_7, window_bounds = array<i64: 128, 128>}, {pipeline_mode = #tpu.pipeline_mode<synchronous>, transform_indices = @transform_8, window_bounds = array<i64: 1, 128>}, {transform_indices = @transform_9, window_bounds = array<i64: 16, 128>}]} {
    %c0 = arith.constant 0 : index
    %c0_0 = arith.constant 0 : index
    %0 = vector.load %arg1[%c0, %c0_0] : memref<16x128xbf16, #tpu.memory_space<vmem>>, vector<16x128xbf16>
    %c0_1 = arith.constant 0 : index
    %c0_2 = arith.constant 0 : index
    %1 = vector.load %arg2[%c0_1, %c0_2] : memref<128x128xbf16, #tpu.memory_space<vmem>>, vector<128x128xbf16>
    %cst = arith.constant dense<0.000000e+00> : vector<16x128xf32>
    %2 = tpu.matmul %0, %1, %cst {dimension_numbers = #tpu.dot_dimension_numbers<[1], [0], [0], [1], [0, 0, 1, 1], [], []>} : vector<16x128xbf16>, vector<128x128xbf16>, vector<16x128xf32> -> vector<16x128xf32>
    %c0_3 = arith.constant 0 : index
    %c0_4 = arith.constant 0 : index
    %3 = vector.load %arg3[%c0_3, %c0_4] : memref<1x128xf32, #tpu.memory_space<vmem>>, vector<1x128xf32>
    %4 = vector.broadcast %3 : vector<1x128xf32> to vector<16x128xf32>
    %5 = arith.addf %2, %4 : vector<16x128xf32>
    %cst_5 = arith.constant 0.000000e+00 : f32
    %6 = vector.broadcast %cst_5 : f32 to vector<16x128xf32>
    %7 = arith.maximumf %5, %6 : vector<16x128xf32>
    %8 = arith.truncf %7 : vector<16x128xf32> to vector<16x128xbf16>
    %c0_6 = arith.constant 0 : index
    %c0_7 = arith.constant 0 : index
    %9 = vector.load %arg4[%c0_6, %c0_7] : memref<128x128xbf16, #tpu.memory_space<vmem>>, vector<128x128xbf16>
    %cst_8 = arith.constant dense<0.000000e+00> : vector<16x128xf32>
    %10 = tpu.matmul %8, %9, %cst_8 {dimension_numbers = #tpu.dot_dimension_numbers<[1], [0], [0], [1], [0, 0, 1, 1], [], []>} : vector<16x128xbf16>, vector<128x128xbf16>, vector<16x128xf32> -> vector<16x128xf32>
    %c0_9 = arith.constant 0 : index
    %c0_10 = arith.constant 0 : index
    %11 = vector.load %arg5[%c0_9, %c0_10] : memref<1x128xf32, #tpu.memory_space<vmem>>, vector<1x128xf32>
    %12 = vector.broadcast %11 : vector<1x128xf32> to vector<16x128xf32>
    %13 = arith.addf %10, %12 : vector<16x128xf32>
    %cst_11 = arith.constant 0.000000e+00 : f32
    %14 = vector.broadcast %cst_11 : f32 to vector<16x128xf32>
    %15 = arith.maximumf %13, %14 : vector<16x128xf32>
    %16 = arith.truncf %15 : vector<16x128xf32> to vector<16x128xbf16>
    %c0_12 = arith.constant 0 : index
    %c0_13 = arith.constant 0 : index
    %17 = vector.load %arg6[%c0_12, %c0_13] : memref<128x128xbf16, #tpu.memory_space<vmem>>, vector<128x128xbf16>
    %cst_14 = arith.constant dense<0.000000e+00> : vector<16x128xf32>
    %18 = tpu.matmul %16, %17, %cst_14 {dimension_numbers = #tpu.dot_dimension_numbers<[1], [0], [0], [1], [0, 0, 1, 1], [], []>} : vector<16x128xbf16>, vector<128x128xbf16>, vector<16x128xf32> -> vector<16x128xf32>
    %c0_15 = arith.constant 0 : index
    %c0_16 = arith.constant 0 : index
    %19 = vector.load %arg7[%c0_15, %c0_16] : memref<1x128xf32, #tpu.memory_space<vmem>>, vector<1x128xf32>
    %20 = vector.broadcast %19 : vector<1x128xf32> to vector<16x128xf32>
    %21 = arith.addf %18, %20 : vector<16x128xf32>
    %cst_17 = arith.constant 0.000000e+00 : f32
    %22 = vector.broadcast %cst_17 : f32 to vector<16x128xf32>
    %23 = arith.maximumf %21, %22 : vector<16x128xf32>
    %24 = arith.truncf %23 : vector<16x128xf32> to vector<16x128xbf16>
    %c0_18 = arith.constant 0 : index
    %c0_19 = arith.constant 0 : index
    %25 = vector.load %arg8[%c0_18, %c0_19] : memref<128x128xbf16, #tpu.memory_space<vmem>>, vector<128x128xbf16>
    %cst_20 = arith.constant dense<0.000000e+00> : vector<16x128xf32>
    %26 = tpu.matmul %24, %25, %cst_20 {dimension_numbers = #tpu.dot_dimension_numbers<[1], [0], [0], [1], [0, 0, 1, 1], [], []>} : vector<16x128xbf16>, vector<128x128xbf16>, vector<16x128xf32> -> vector<16x128xf32>
    %c0_21 = arith.constant 0 : index
    %c0_22 = arith.constant 0 : index
    %27 = vector.load %arg9[%c0_21, %c0_22] : memref<1x128xf32, #tpu.memory_space<vmem>>, vector<1x128xf32>
    %28 = vector.broadcast %27 : vector<1x128xf32> to vector<16x128xf32>
    %29 = arith.addf %26, %28 : vector<16x128xf32>
    %cst_23 = arith.constant 0.000000e+00 : f32
    %30 = vector.broadcast %cst_23 : f32 to vector<16x128xf32>
    %31 = arith.maximumf %29, %30 : vector<16x128xf32>
    %c0_24 = arith.constant 0 : index
    %c0_25 = arith.constant 0 : index
    %32 = vector.load %arg10[%c0_24, %c0_25] : memref<16x128xf32, #tpu.memory_space<vmem>>, vector<16x128xf32>
    tpu.vector_store %arg10[%c0_24, %c0_25], %31 {strides = array<i32>} : memref<16x128xf32, #tpu.memory_space<vmem>>, vector<16x128xf32>,
    return
  }
  func.func @transform_0(%arg0: i32) -> (i32, i32) {
    %c0_i32 = arith.constant 0 : i32
    %c0_i32_0 = arith.constant 0 : i32
    return %arg0, %c0_i32 : i32, i32
  }
  func.func @transform_1(%arg0: i32) -> (i32, i32) {
    %c0_i32 = arith.constant 0 : i32
    %c0_i32_0 = arith.constant 0 : i32
    %c0_i32_1 = arith.constant 0 : i32
    return %c0_i32, %c0_i32_0 : i32, i32
  }
  func.func @transform_2(%arg0: i32) -> (i32, i32) {
    %c0_i32 = arith.constant 0 : i32
    %c0_i32_0 = arith.constant 0 : i32
    %c0_i32_1 = arith.constant 0 : i32
    return %c0_i32, %c0_i32_0 : i32, i32
  }
  func.func @transform_3(%arg0: i32) -> (i32, i32) {
    %c0_i32 = arith.constant 0 : i32
    %c0_i32_0 = arith.constant 0 : i32
    %c0_i32_1 = arith.constant 0 : i32
    return %c0_i32, %c0_i32_0 : i32, i32
  }
  func.func @transform_4(%arg0: i32) -> (i32, i32) {
    %c0_i32 = arith.constant 0 : i32
    %c0_i32_0 = arith.constant 0 : i32
    %c0_i32_1 = arith.constant 0 : i32
    return %c0_i32, %c0_i32_0 : i32, i32
  }
  func.func @transform_5(%arg0: i32) -> (i32, i32) {
    %c0_i32 = arith.constant 0 : i32
    %c0_i32_0 = arith.constant 0 : i32
    %c0_i32_1 = arith.constant 0 : i32
    return %c0_i32, %c0_i32_0 : i32, i32
  }
  func.func @transform_6(%arg0: i32) -> (i32, i32) {
    %c0_i32 = arith.constant 0 : i32
    %c0_i32_0 = arith.constant 0 : i32
    %c0_i32_1 = arith.constant 0 : i32
    return %c0_i32, %c0_i32_0 : i32, i32
  }
  func.func @transform_7(%arg0: i32) -> (i32, i32) {
    %c0_i32 = arith.constant 0 : i32
    %c0_i32_0 = arith.constant 0 : i32
    %c0_i32_1 = arith.constant 0 : i32
    return %c0_i32, %c0_i32_0 : i32, i32
  }
  func.func @transform_8(%arg0: i32) -> (i32, i32) {
    %c0_i32 = arith.constant 0 : i32
    %c0_i32_0 = arith.constant 0 : i32
    %c0_i32_1 = arith.constant 0 : i32
    return %c0_i32, %c0_i32_0 : i32, i32
  }
  func.func @transform_9(%arg0: i32) -> (i32, i32) {
    %c0_i32 = arith.constant 0 : i32
    %c0_i32_0 = arith.constant 0 : i32
    return %arg0, %c0_i32 : i32, i32
  }
}

module attributes {stable_mosaic.version = 11 : i64} {
  func.func @kernel(%arg0: i32, %arg1: memref<16x128xbf16, #tpu.memory_space<vmem>>, %arg2: memref<128x128xbf16, #tpu.memory_space<vmem>>, %arg3: memref<1x128xf32, #tpu.memory_space<vmem>>, %arg4: memref<128x128xbf16, #tpu.memory_space<vmem>>, %arg5: memref<1x128xf32, #tpu.memory_space<vmem>>, %arg6: memref<128x128xbf16, #tpu.memory_space<vmem>>, %arg7: memref<1x128xf32, #tpu.memory_space<vmem>>, %arg8: memref<128x128xbf16, #tpu.memory_space<vmem>>, %arg9: memref<1x128xf32, #tpu.memory_space<vmem>>, %arg10: memref<16x128xf32, #tpu.memory_space<vmem>>) attributes {dimension_semantics = [#tpu.dimension_semantics<parallel>], iteration_bounds = array<i64: 1>, scalar_prefetch = 0 : i64, scratch_operands = 0 : i64, tpu.core_type = #tpu.core_type<tc>, window_params = [{transform_indices = @transform_0, window_bounds = array<i64: 16, 128>}, {pipeline_mode = #tpu.pipeline_mode<synchronous>, transform_indices = @transform_1, window_bounds = array<i64: 128, 128>}, {pipeline_mode = #tpu.pipeline_mode<synchronous>, transform_indices = @transform_2, window_bounds = array<i64: 1, 128>}, {pipeline_mode = #tpu.pipeline_mode<synchronous>, transform_indices = @transform_3, window_bounds = array<i64: 128, 128>}, {pipeline_mode = #tpu.pipeline_mode<synchronous>, transform_indices = @transform_4, window_bounds = array<i64: 1, 128>}, {pipeline_mode = #tpu.pipeline_mode<synchronous>, transform_indices = @transform_5, window_bounds = array<i64: 128, 128>}, {pipeline_mode = #tpu.pipeline_mode<synchronous>, transform_indices = @transform_6, window_bounds = array<i64: 1, 128>}, {pipeline_mode = #tpu.pipeline_mode<synchronous>, transform_indices = @transform_7, window_bounds = array<i64: 128, 128>}, {pipeline_mode = #tpu.pipeline_mode<synchronous>, transform_indices = @transform_8, window_bounds = array<i64: 1, 128>}, {transform_indices = @transform_9, window_bounds = array<i64: 16, 128>}]} {
    %c0 = arith.constant 0 : index
    %c0_0 = arith.constant 0 : index
    %0 = vector.load %arg1[%c0, %c0_0] : memref<16x128xbf16, #tpu.memory_space<vmem>>, vector<16x128xbf16>
    %c0_1 = arith.constant 0 : index
    %c0_2 = arith.constant 0 : index
    %1 = vector.load %arg2[%c0_1, %c0_2] : memref<128x128xbf16, #tpu.memory_space<vmem>>, vector<128x128xbf16>
    %cst = arith.constant dense<0.000000e+00> : vector<16x128xf32>
    %2 = tpu.matmul %0, %1, %cst {dimension_numbers = #tpu.dot_dimension_numbers<[1], [0], [0], [1], [0, 0, 1, 1], [], []>} : vector<16x128xbf16>, vector<128x128xbf16>, vector<16x128xf32> -> vector<16x128xf32>
    %c0_3 = arith.constant 0 : index
    %c0_4 = arith.constant 0 : index
    %3 = vector.load %arg3[%c0_3, %c0_4] : memref<1x128xf32, #tpu.memory_space<vmem>>, vector<1x128xf32>
    %4 = vector.broadcast %3 : vector<1x128xf32> to vector<16x128xf32>
    %5 = arith.addf %2, %4 : vector<16x128xf32>
    %cst_5 = arith.constant 0.000000e+00 : f32
    %6 = vector.broadcast %cst_5 : f32 to vector<16x128xf32>
    %7 = arith.maximumf %5, %6 : vector<16x128xf32>
    %8 = arith.truncf %7 : vector<16x128xf32> to vector<16x128xbf16>
    %c0_6 = arith.constant 0 : index
    %c0_7 = arith.constant 0 : index
    %9 = vector.load %arg4[%c0_6, %c0_7] : memref<128x128xbf16, #tpu.memory_space<vmem>>, vector<128x128xbf16>
    %cst_8 = arith.constant dense<0.000000e+00> : vector<16x128xf32>
    %10 = tpu.matmul %8, %9, %cst_8 {dimension_numbers = #tpu.dot_dimension_numbers<[1], [0], [0], [1], [0, 0, 1, 1], [], []>} : vector<16x128xbf16>, vector<128x128xbf16>, vector<16x128xf32> -> vector<16x128xf32>
    %c0_9 = arith.constant 0 : index
    %c0_10 = arith.constant 0 : index
    %11 = vector.load %arg5[%c0_9, %c0_10] : memref<1x128xf32, #tpu.memory_space<vmem>>, vector<1x128xf32>
    %12 = vector.broadcast %11 : vector<1x128xf32> to vector<16x128xf32>
    %13 = arith.addf %10, %12 : vector<16x128xf32>
    %cst_11 = arith.constant 0.000000e+00 : f32
    %14 = vector.broadcast %cst_11 : f32 to vector<16x128xf32>
    %15 = arith.maximumf %13, %14 : vector<16x128xf32>
    %16 = arith.truncf %15 : vector<16x128xf32> to vector<16x128xbf16>
    %c0_12 = arith.constant 0 : index
    %c0_13 = arith.constant 0 : index
    %17 = vector.load %arg6[%c0_12, %c0_13] : memref<128x128xbf16, #tpu.memory_space<vmem>>, vector<128x128xbf16>
    %cst_14 = arith.constant dense<0.000000e+00> : vector<16x128xf32>
    %18 = tpu.matmul %16, %17, %cst_14 {dimension_numbers = #tpu.dot_dimension_numbers<[1], [0], [0], [1], [0, 0, 1, 1], [], []>} : vector<16x128xbf16>, vector<128x128xbf16>, vector<16x128xf32> -> vector<16x128xf32>
    %c0_15 = arith.constant 0 : index
    %c0_16 = arith.constant 0 : index
    %19 = vector.load %arg7[%c0_15, %c0_16] : memref<1x128xf32, #tpu.memory_space<vmem>>, vector<1x128xf32>
    %20 = vector.broadcast %19 : vector<1x128xf32> to vector<16x128xf32>
    %21 = arith.addf %18, %20 : vector<16x128xf32>
    %cst_17 = arith.constant 0.000000e+00 : f32
    %22 = vector.broadcast %cst_17 : f32 to vector<16x128xf32>
    %23 = arith.maximumf %21, %22 : vector<16x128xf32>
    %24 = arith.truncf %23 : vector<16x128xf32> to vector<16x128xbf16>
    %c0_18 = arith.constant 0 : index
    %c0_19 = arith.constant 0 : index
    %25 = vector.load %arg8[%c0_18, %c0_19] : memref<128x128xbf16, #tpu.memory_space<vmem>>, vector<128x128xbf16>
    %cst_20 = arith.constant dense<0.000000e+00> : vector<16x128xf32>
    %26 = tpu.matmul %24, %25, %cst_20 {dimension_numbers = #tpu.dot_dimension_numbers<[1], [0], [0], [1], [0, 0, 1, 1], [], []>} : vector<16x128xbf16>, vector<128x128xbf16>, vector<16x128xf32> -> vector<16x128xf32>
    %c0_21 = arith.constant 0 : index
    %c0_22 = arith.constant 0 : index
    %27 = vector.load %arg9[%c0_21, %c0_22] : memref<1x128xf32, #tpu.memory_space<vmem>>, vector<1x128xf32>
    %28 = vector.broadcast %27 : vector<1x128xf32> to vector<16x128xf32>
    %29 = arith.addf %26, %28 : vector<16x128xf32>
    %cst_23 = arith.constant 0.000000e+00 : f32
    %30 = vector.broadcast %cst_23 : f32 to vector<16x128xf32>
    %31 = arith.maximumf %29, %30 : vector<16x128xf32>
    %c0_24 = arith.constant 0 : index
    %c0_25 = arith.constant 0 : index
    %32 = vector.load %arg10[%c0_24, %c0_25] : memref<16x128xf32, #tpu.memory_space<vmem>>, vector<16x128xf32>
    tpu.vector_store %arg10[%c0_24, %c0_25], %31 {strides = array<i32>} : memref<16x128xf32, #tpu.memory_space<vmem>>, vector<16x128xf32>,
    return
  }
  func.func @transform_0(%arg0: i32) -> (i32, i32) {
    %c0_i32 = arith.constant 0 : i32
    %c0_i32_0 = arith.constant 0 : i32
    return %arg0, %c0_i32 : i32, i32
  }
  func.func @transform_1(%arg0: i32) -> (i32, i32) {
    %c0_i32 = arith.constant 0 : i32
    %c0_i32_0 = arith.constant 0 : i32
    %c0_i32_1 = arith.constant 0 : i32
    return %c0_i32, %c0_i32_0 : i32, i32
  }
  func.func @transform_2(%arg0: i32) -> (i32, i32) {
    %c0_i32 = arith.constant 0 : i32
    %c0_i32_0 = arith.constant 0 : i32
    %c0_i32_1 = arith.constant 0 : i32
    return %c0_i32, %c0_i32_0 : i32, i32
  }
  func.func @transform_3(%arg0: i32) -> (i32, i32) {
    %c0_i32 = arith.constant 0 : i32
    %c0_i32_0 = arith.constant 0 : i32
    %c0_i32_1 = arith.constant 0 : i32
    return %c0_i32, %c0_i32_0 : i32, i32
  }
  func.func @transform_4(%arg0: i32) -> (i32, i32) {
    %c0_i32 = arith.constant 0 : i32
    %c0_i32_0 = arith.constant 0 : i32
    %c0_i32_1 = arith.constant 0 : i32
    return %c0_i32, %c0_i32_0 : i32, i32
  }
  func.func @transform_5(%arg0: i32) -> (i32, i32) {
    %c0_i32 = arith.constant 0 : i32
    %c0_i32_0 = arith.constant 0 : i32
    %c0_i32_1 = arith.constant 0 : i32
    return %c0_i32, %c0_i32_0 : i32, i32
  }
  func.func @transform_6(%arg0: i32) -> (i32, i32) {
    %c0_i32 = arith.constant 0 : i32
    %c0_i32_0 = arith.constant 0 : i32
    %c0_i32_1 = arith.constant 0 : i32
    return %c0_i32, %c0_i32_0 : i32, i32
  }
  func.func @transform_7(%arg0: i32) -> (i32, i32) {
    %c0_i32 = arith.constant 0 : i32
    %c0_i32_0 = arith.constant 0 : i32
    %c0_i32_1 = arith.constant 0 : i32
    return %c0_i32, %c0_i32_0 : i32, i32
  }
  func.func @transform_8(%arg0: i32) -> (i32, i32) {
    %c0_i32 = arith.constant 0 : i32
    %c0_i32_0 = arith.constant 0 : i32
    %c0_i32_1 = arith.constant 0 : i32
    return %c0_i32, %c0_i32_0 : i32, i32
  }
  func.func @transform_9(%arg0: i32) -> (i32, i32) {
    %c0_i32 = arith.constant 0 : i32
    %c0_i32_0 = arith.constant 0 : i32
    return %arg0, %c0_i32 : i32, i32
  }
}

</mosaic_0001>

<bundles_post_ra>
// kernel: tpu_custom_call.1
= control target key start
LH: loop header
LB: loop body
LE: loop exit
PB: predicated region body
PF: predicated region fallthrough
CT: control target
= control target key end

     0   :  { %14 = vsyncpa [#allocation3], 0  ;;  %s1063_s0 = inlined_call_operand.hbm [shape: bf16[16,128], index: 0, kind: input, shape index: {}]   ;;  %s1064_s1 = inlined_call_operand.hbm [shape: bf16[128,128], index: 1, kind: input, shape index: {}]   ;;  %s1065_s2 = inlined_call_operand.vmem [shape: f32[1,128], index: 2, kind: input, shape index: {}]   ;;  %s1066_s3 = inlined_call_operand.hbm [shape: bf16[128,128], index: 3, kind: input, shape index: {}]   ;;  %s1067_s4 = inlined_call_operand.vmem [shape: f32[1,128], index: 4, kind: input, shape index: {}]   ;;  %s1068_s5 = inlined_call_operand.hbm [shape: bf16[128,128], index: 5, kind: input, shape index: {}]   ;;  %s1069_s6 = inlined_call_operand.vmem [shape: f32[1,128], index: 6, kind: input, shape index: {}]   ;;  %s1070_s7 = inlined_call_operand.hbm [shape: bf16[128,128], index: 7, kind: input, shape index: {}]   ;;  %s1071_s8 = inlined_call_operand.vmem [shape: f32[1,128], index: 8, kind: input, shape index: {}]   ;;  %s1072_s9 = inlined_call_operand.hbm [shape: f32[16,128], index: 9, kind: output, shape index: {}]  }
   0x1   :  { %15 = vsyncpa [#allocation6], 0 }
   0x2   :  { %16 = vsyncpa [#allocation9], 0 }
   0x3   :  { %17 = vsyncpa [#allocation4], 0  ;;  %s916_s30 = smov [#allocation5]   ;;  %s917_s11 = smov [#allocation8]  }
   0x4   :  { %s35_s10 = sshll.u32 %s916_s30, 4  ;;  %s63_s12 = sshll.u32 %s917_s11, 4  ;;  %s36_s10 = int_to_ptr.vmem [resolvable:$true] %s35_s10  ;;  %s64_s12 = int_to_ptr.vmem [resolvable:$true] %s63_s12 }
   0x5   :  { %s796_s13 = scalar_lea.vmem %s36_s10, 1024  ;;  %p801_p1 = scmp.lt.s32.totalorder %s36_s10, %s36_s10 }
   0x6   :  { %p797_p0 = scmp.ne.s32.totalorder %s36_s10, %s796_s13  ;;  %p802_p2 = scmp.lt.s32.totalorder %s796_s13, %s796_s13 }
   0x8   :  { %p803_p3 = por %p802_p2, %p801_p1 }
   0xa   :  { %p804_p4 = pnand %p803_p3, %p797_p0 }
   0xc   :  { %807 = shalt.err (!%p804_p4)
}
   0xd   :  { %s918_s14 = smov 64   ;;  %s919_s15 = smov 4  }
   0xe   :  { %41 = dma.hbm_to_vmem [thread:$0]  %s1064_s1, 1024, %s36_s10, [#allocation6], %s918_s14, %s918_s14, %s919_s15  }
   0xf   :  { %s816_s18 = scalar_lea.vmem %s64_s12, 1024  ;;  %p821_p6 = scmp.lt.s32.totalorder %s64_s12, %s64_s12 }
  0x10   :  { %p817_p5 = scmp.ne.s32.totalorder %s64_s12, %s816_s18  ;;  %p822_p7 = scmp.lt.s32.totalorder %s816_s18, %s816_s18 }
  0x12   :  { %p823_p8 = por %p822_p7, %p821_p6 }
  0x14   :  { %p824_p9 = pnand %p823_p8, %p817_p5 }
  0x16   :  { %827 = shalt.err (!%p824_p9)
}
  0x17   :  { %69 = dma.hbm_to_vmem [thread:$0]  %s1068_s5, 1024, %s64_s12, [#allocation9], %s918_s14, %s918_s14, %s919_s15  }
  0x18   :  { %s920_s21 = smov [#allocation2]   ;;  %s921_s23 = smov [#allocation7]  }
  0x19   :  { %s23_s22 = sshll.u32 %s920_s21, 4  ;;  %s49_s24 = sshll.u32 %s921_s23, 4  ;;  %s24_s22 = int_to_ptr.vmem [resolvable:$true] %s23_s22  ;;  %s50_s24 = int_to_ptr.vmem [resolvable:$true] %s49_s24 }
  0x1a   :  { %s836_s1 = scalar_lea.vmem %s24_s22, 128  ;;  %p841_p11 = scmp.lt.s32.totalorder %s24_s22, %s24_s22 }
  0x1b   :  { %p837_p10 = scmp.ne.s32.totalorder %s24_s22, %s836_s1  ;;  %p842_p12 = scmp.lt.s32.totalorder %s836_s1, %s836_s1 }
  0x1d   :  { %p843_p13 = por %p842_p12, %p841_p11 }
  0x1f   :  { %p844_p0 = pnand %p843_p13, %p837_p10 }
  0x21   :  { %847 = shalt.err (!%p844_p0)
}
  0x22   :  { %29 = dma.hbm_to_vmem [thread:$0]  %s1063_s0, 128, %s24_s22, [#allocation3], %s918_s14, %s918_s14, %s919_s15  }
  0x23   :  { %s856_s5 = scalar_lea.vmem %s50_s24, 1024  ;;  %p861_p2 = scmp.lt.s32.totalorder %s50_s24, %s50_s24 }
  0x24   :  { %p857_p1 = scmp.ne.s32.totalorder %s50_s24, %s856_s5  ;;  %p862_p3 = scmp.lt.s32.totalorder %s856_s5, %s856_s5 }
  0x26   :  { %p863_p4 = por %p862_p3, %p861_p2 }
  0x28   :  { %p864_p5 = pnand %p863_p4, %p857_p1 }
  0x2a   :  { %867 = shalt.err (!%p864_p5)
}
  0x2b   :  { %55 = dma.hbm_to_vmem [thread:$0]  %s1066_s3, 1024, %s50_s24, [#allocation6], %s918_s14, %s918_s14, %s919_s15  }
  0x2c   :  { %s922_s29 = smov [#allocation10]  }
  0x2d   :  { %s77_s30 = sshll.u32 %s922_s29, 4  ;;  %s78_s30 = int_to_ptr.vmem [resolvable:$true] %s77_s30 }
  0x2e   :  { %s876_s10 = scalar_lea.vmem %s78_s30, 1024  ;;  %p881_p7 = scmp.lt.s32.totalorder %s78_s30, %s78_s30 }
  0x2f   :  { %p877_p6 = scmp.ne.s32.totalorder %s78_s30, %s876_s10  ;;  %p882_p8 = scmp.lt.s32.totalorder %s876_s10, %s876_s10 }
  0x31   :  { %p883_p9 = por %p882_p8, %p881_p7 }
  0x33   :  { %p884_p10 = pnand %p883_p9, %p877_p6 }
  0x35   :  { %887 = shalt.err (!%p884_p10)
}
  0x36   :  { %83 = dma.hbm_to_vmem [thread:$0]  %s1070_s7, 1024, %s78_s30, [#allocation9], %s918_s14, %s918_s14, %s919_s15  }
  0x37   :  { %908 = dma.done.wait [#allocation3], 128  }
  0x38   :  { %909 = vsyncadd [#allocation3], 4294967168 }
  0x39   :  { %910 = dma.done.wait [#allocation6], 2048  }
  0x3a   :  { %911 = vsyncadd [#allocation6], 4294965248 }
  0x3b   :  { %912 = dma.done.wait [#allocation9], 2048  }
  0x3c   :  { %913 = vsyncadd [#allocation9], 4294965248  ;;  %v923_v0 = vmov 0.0   ;;  %vm924_vm0 = vmmov 0   ;;  %v755_v1 = vld [vmem:[#allocation5 + $0x38] sm:$0xff]   ;;  %v756_v2 = vld [vmem:[#allocation5 + $0x30] sm:$0xff]  }
  0x3d   :  { %663 = vmatprep.subr.bf16.mxu0 %v923_v0  ;;  %679 = vmatprep.mubr.msk.bf16.mxu0 %vm924_vm0, %v923_v0  ;;  %v757_v3 = vld [vmem:[#allocation5 + $0x28] sm:$0xff]   ;;  %v764_v4 = vld [vmem:[#allocation7 + $0x38] sm:$0xff]   ;;  %v758_v5 = vld [vmem:[#allocation5 + $0x20] sm:$0xff]   ;;  %s925_s16 = smov [#allocation11]  }
  0x3e   :  { %683 = vmatprep.subr.bf16.mxu1 %v923_v0  ;;  %699 = vmatprep.mubr.msk.bf16.mxu1 %vm924_vm0, %v923_v0  ;;  %v765_v6 = vld [vmem:[#allocation7 + $0x30] sm:$0xff]   ;;  %v759_v7 = vld [vmem:[#allocation5 + $0x18] sm:$0xff]   ;;  %v766_v8 = vld [vmem:[#allocation7 + $0x28] sm:$0xff]  }
  0x3f   :  { %664 = vmatpush3.bf16.msra.mxu0 %v755_v1  ;;  %684 = vmatpush3.bf16.msra.mxu1 %v764_v4  ;;  %v760_v9 = vld [vmem:[#allocation5 + $0x10] sm:$0xff]   ;;  %v767_v10 = vld [vmem:[#allocation7 + $0x20] sm:$0xff]   ;;  %v761_v11 = vld [vmem:[#allocation5 + $0x8] sm:$0xff]  }
  0x40   :  { %665 = vmatprep.subr.bf16.mxu0 %v923_v0  ;;  %685 = vmatprep.subr.bf16.mxu1 %v923_v0  ;;  %v768_v12 = vld [vmem:[#allocation7 + $0x18] sm:$0xff]   ;;  %v762_v13 = vld [vmem:[#allocation5] sm:$0xff]   ;;  %v769_v15 = vld [vmem:[#allocation7 + $0x10] sm:$0xff]  }
  0x41   :  { %v763_v14 = vld [vmem:[#allocation2] sm:$0xff]   ;;  %v770_v16 = vld [vmem:[#allocation7 + $0x8] sm:$0xff]   ;;  %v771_v17 = vld [vmem:[#allocation7] sm:$0xff]  }
  0x42   :  { %v772_v18 = vld [vmem:[#allocation8 + $0x38] sm:$0xff]   ;;  %v773_v19 = vld [vmem:[#allocation8 + $0x30] sm:$0xff]   ;;  %v774_v20 = vld [vmem:[#allocation8 + $0x28] sm:$0xff]  }
  0x43   :  { %666 = vmatpush3.bf16.msra.mxu0 %v756_v2  ;;  %686 = vmatpush3.bf16.msra.mxu1 %v765_v6  ;;  %v775_v21 = vld [vmem:[#allocation8 + $0x20] sm:$0xff]   ;;  %v776_v22 = vld [vmem:[#allocation8 + $0x18] sm:$0xff]   ;;  %v777_v33 = vld [vmem:[#allocation8 + $0x10] sm:$0xff]  }
  0x44   :  { %667 = vmatprep.subr.bf16.mxu0 %v923_v0  ;;  %687 = vmatprep.subr.bf16.mxu1 %v923_v0  ;;  %v590_v23 = vld [vmem:[%s1065_s2] ss:$0 sm:$0xff]  ;;  %v778_v34 = vld [vmem:[#allocation8 + $0x8] sm:$0xff]   ;;  %v779_v35 = vld [vmem:[#allocation8] sm:$0xff]  }
  0x45   :  { %v780_v36 = vld [vmem:[#allocation10 + $0x38] sm:$0xff]   ;;  %v781_v37 = vld [vmem:[#allocation10 + $0x30] sm:$0xff]   ;;  %v782_v38 = vld [vmem:[#allocation10 + $0x28] sm:$0xff]  }
  0x46   :  { %v783_v39 = vld [vmem:[#allocation10 + $0x20] sm:$0xff]   ;;  %v784_v40 = vld [vmem:[#allocation10 + $0x18] sm:$0xff]   ;;  %v785_v51 = vld [vmem:[#allocation10 + $0x10] sm:$0xff]  }
  0x47   :  { %668 = vmatpush3.bf16.msra.mxu0 %v757_v3  ;;  %688 = vmatpush3.bf16.msra.mxu1 %v766_v8  ;;  %v600_v41 = vld [vmem:[%s1067_s4] ss:$0 sm:$0xff]  ;;  %v786_v52 = vld [vmem:[#allocation10 + $0x8] sm:$0xff]   ;;  %v787_v53 = vld [vmem:[#allocation10] sm:$0xff]  }
  0x48   :  { %669 = vmatprep.subr.bf16.mxu0 %v923_v0  ;;  %689 = vmatprep.subr.bf16.mxu1 %v923_v0  ;;  %v609_v54 = vld [vmem:[%s1069_s6] ss:$0 sm:$0xff]  ;;  %s576_s6 = sshll.u32 %s925_s16, 4  ;;  %s577_s6 = int_to_ptr.vmem [resolvable:$true] %s576_s6 }
  0x49   :  { %s888_s17 = scalar_lea.vmem %s577_s6, 256  ;;  %p893_p12 = scmp.lt.s32.totalorder %s577_s6, %s577_s6 }
  0x4a   :  { %p889_p11 = scmp.ne.s32.totalorder %s577_s6, %s888_s17  ;;  %p894_p13 = scmp.lt.s32.totalorder %s888_s17, %s888_s17 }
  0x4b   :  { %670 = vmatpush3.bf16.msra.mxu0 %v758_v5  ;;  %690 = vmatpush3.bf16.msra.mxu1 %v767_v10 }
  0x4c   :  { %671 = vmatprep.subr.bf16.mxu0 %v923_v0  ;;  %691 = vmatprep.subr.bf16.mxu1 %v923_v0  ;;  %p895_p0 = por %p894_p13, %p893_p12 }
  0x4e   :  { %p896_p1 = pnand %p895_p0, %p889_p11 }
  0x4f   :  { %672 = vmatpush3.bf16.msra.mxu0 %v759_v7  ;;  %692 = vmatpush3.bf16.msra.mxu1 %v768_v12 }
  0x50   :  { %673 = vmatprep.subr.bf16.mxu0 %v923_v0  ;;  %693 = vmatprep.subr.bf16.mxu1 %v923_v0 }
  0x53   :  { %674 = vmatpush3.bf16.msra.mxu0 %v760_v9  ;;  %694 = vmatpush3.bf16.msra.mxu1 %v769_v15 }
  0x54   :  { %675 = vmatprep.subr.bf16.mxu0 %v923_v0  ;;  %695 = vmatprep.subr.bf16.mxu1 %v923_v0 }
  0x57   :  { %676 = vmatpush3.bf16.msra.mxu0 %v761_v11  ;;  %696 = vmatpush3.bf16.msra.mxu1 %v770_v16 }
  0x58   :  { %677 = vmatprep.subr.bf16.mxu0 %v923_v0  ;;  %697 = vmatprep.subr.bf16.mxu1 %v923_v0 }
  0x5b   :  { %678 = vmatpush3.bf16.msra.mxu0 %v762_v13  ;;  %698 = vmatpush3.bf16.msra.mxu1 %v771_v17 }
  0x5c   :  { %703 = vmatprep.subr.bf16.mxu0 %v923_v0  ;;  %723 = vmatprep.subr.bf16.mxu1 %v923_v0 }
  0x5e   :  { %680 = vmatmul.mubr.bf16.vlgmr.msra.gmra.mxu0 %v763_v14 }
  0x5f   :  { %719 = vmatprep.mubr.msk.bf16.mxu0 %vm924_vm0, %v923_v0  ;;  %704 = vmatpush3.bf16.msra.mxu0 %v772_v18 }
  0x60   :  { %705 = vmatprep.subr.bf16.mxu0 %v923_v0 }
  0x63   :  { %706 = vmatpush3.bf16.msra.mxu0 %v773_v19 }
  0x64   :  { %707 = vmatprep.subr.bf16.mxu0 %v923_v0 }
  0x67   :  { %708 = vmatpush3.bf16.msra.mxu0 %v774_v20 }
  0x68   :  { %709 = vmatprep.subr.bf16.mxu0 %v923_v0 }
  0x6b   :  { %710 = vmatpush3.bf16.msra.mxu0 %v775_v21 }
  0x6c   :  { %711 = vmatprep.subr.bf16.mxu0 %v923_v0 }
  0x6f   :  { %712 = vmatpush3.bf16.msra.mxu0 %v776_v22 }
  0x70   :  { %713 = vmatprep.subr.bf16.mxu0 %v923_v0 }
  0x73   :  { %714 = vmatpush3.bf16.msra.mxu0 %v777_v33 }
  0x74   :  { %715 = vmatprep.subr.bf16.mxu0 %v923_v0 }
  0x77   :  { %716 = vmatpush3.bf16.msra.mxu0 %v778_v34 }
  0x78   :  { %717 = vmatprep.subr.bf16.mxu0 %v923_v0 }
  0x7b   :  { %718 = vmatpush3.bf16.msra.mxu0 %v779_v35 }
 0x11e   :  { %v215_v24 = vpop.f32.mrf.mxu0 }
 0x11f   :  { %v216_v26 = vadd.f32 %v590_v23, %v215_v24 }
 0x120   :  { %v681_v25 = vpop.f32.mrf.mxu0 }
 0x121   :  { %v222_v30 = vmax.f32 %v216_v26, 0.0 }
 0x122   :  { %v218_v27 = vpop.f32.mrf.mxu0 }
 0x123   :  { %v219_v28 = vadd.f32 %v590_v23, %v218_v27 }
 0x124   :  { %v682_v29 = vpop.f32.mrf.mxu0 }
 0x125   :  { %v223_v31 = vmax.f32 %v219_v28, 0.0 }
 0x127   :  { %v224_v32 = vpack.c.bf16 %v223_v31, %v222_v30 }
 0x129   :  { %700 = vmatmul.mubr.bf16.vlgmr.msra.gmra.mxu1 %v224_v32 }
 0x12a   :  { %739 = vmatprep.mubr.msk.bf16.mxu1 %vm924_vm0, %v923_v0  ;;  %724 = vmatpush3.bf16.msra.mxu1 %v780_v36 }
 0x12b   :  { %725 = vmatprep.subr.bf16.mxu1 %v923_v0 }
 0x12e   :  { %726 = vmatpush3.bf16.msra.mxu1 %v781_v37 }
 0x12f   :  { %727 = vmatprep.subr.bf16.mxu1 %v923_v0 }
 0x132   :  { %728 = vmatpush3.bf16.msra.mxu1 %v782_v38 }
 0x133   :  { %729 = vmatprep.subr.bf16.mxu1 %v923_v0 }
 0x136   :  { %730 = vmatpush3.bf16.msra.mxu1 %v783_v39 }
 0x137   :  { %731 = vmatprep.subr.bf16.mxu1 %v923_v0 }
 0x13a   :  { %732 = vmatpush3.bf16.msra.mxu1 %v784_v40 }
 0x13b   :  { %733 = vmatprep.subr.bf16.mxu1 %v923_v0 }
 0x13e   :  { %734 = vmatpush3.bf16.msra.mxu1 %v785_v51 }
 0x13f   :  { %735 = vmatprep.subr.bf16.mxu1 %v923_v0 }
 0x142   :  { %736 = vmatpush3.bf16.msra.mxu1 %v786_v52 }
 0x143   :  { %737 = vmatprep.subr.bf16.mxu1 %v923_v0  ;;  %v618_v0 = vld [vmem:[%s1071_s8] ss:$0 sm:$0xff] }
 0x146   :  { %738 = vmatpush3.bf16.msra.mxu1 %v787_v53 }
 0x1e9   :  { %v330_v42 = vpop.f32.mrf.mxu1 }
 0x1ea   :  { %v331_v44 = vadd.f32 %v600_v41, %v330_v42 }
 0x1eb   :  { %v701_v43 = vpop.f32.mrf.mxu1 }
 0x1ec   :  { %v337_v48 = vmax.f32 %v331_v44, 0.0 }
 0x1ed   :  { %v333_v45 = vpop.f32.mrf.mxu1 }
 0x1ee   :  { %v334_v46 = vadd.f32 %v600_v41, %v333_v45 }
 0x1ef   :  { %v702_v47 = vpop.f32.mrf.mxu1 }
 0x1f0   :  { %v338_v49 = vmax.f32 %v334_v46, 0.0 }
 0x1f2   :  { %v339_v50 = vpack.c.bf16 %v338_v49, %v337_v48 }
 0x1f4   :  { %720 = vmatmul.mubr.bf16.vlgmr.msra.gmra.mxu0 %v339_v50 }
 0x2b4   :  { %v445_v55 = vpop.f32.mrf.mxu0 }
 0x2b5   :  { %v446_v57 = vadd.f32 %v609_v54, %v445_v55 }
 0x2b6   :  { %v721_v56 = vpop.f32.mrf.mxu0 }
 0x2b7   :  { %v452_v61 = vmax.f32 %v446_v57, 0.0 }
 0x2b8   :  { %v448_v58 = vpop.f32.mrf.mxu0 }
 0x2b9   :  { %v449_v59 = vadd.f32 %v609_v54, %v448_v58 }
 0x2ba   :  { %v722_v60 = vpop.f32.mrf.mxu0 }
 0x2bb   :  { %v453_v62 = vmax.f32 %v449_v59, 0.0 }
 0x2bd   :  { %v454_v63 = vpack.c.bf16 %v453_v62, %v452_v61 }
 0x2bf   :  { %740 = vmatmul.mubr.bf16.vlgmr.msra.gmra.mxu1 %v454_v63 }
 0x37f   :  { %v560_v1 = vpop.f32.mrf.mxu1 }
 0x380   :  { %v561_v2 = vadd.f32 %v618_v0, %v560_v1 }
 0x381   :  { %v741_v3 = vpop.f32.mrf.mxu1 }
 0x382   :  { %v567_v4 = vmax.f32 %v561_v2, 0.0 }
 0x383   :  { %v563_v5 = vpop.f32.mrf.mxu1 }
 0x384   :  { %569 = vst [vmem:[#allocation11] sm:$0xff] %v567_v4  ;;  %v564_v6 = vadd.f32 %v618_v0, %v563_v5 }
 0x385   :  { %v742_v7 = vpop.f32.mrf.mxu1 }
 0x386   :  { %v568_v8 = vmax.f32 %v564_v6, 0.0 }
 0x388   :  { %570 = vst [vmem:[#allocation11 + $0x8] sm:$0xff] %v568_v8 }
 0x389   :  { %899 = shalt.err (!%p896_p1)
}
 0x38a   :  { %s926_s8 = smov 128   ;;  %s927_s18 = smov 8  }
 0x38b   :  { %582 = dma.vmem_to_hbm [thread:$0]  %s577_s6, 256, %s1072_s9, [#allocation4], %s926_s8, %s926_s8, %s927_s18  }
 0x38c   :  { %914 = dma.done.wait [#allocation4], 256  }
 0x38d   :  { %915 = vsyncadd [#allocation4], 4294967040 }
 0x38e   :  { %586 = vsyncpa [#allocation3], 1 }
 0x38f   :  { %587 = vsyncpa [#allocation6], 1 }
 0x390   :  { %588 = vsyncpa [#allocation9], 1 }
 0x391   :  { %589 = vsyncpa [#allocation4], 1 }

// kernel: tpu_custom_call.1
= control target key start
LH: loop header
LB: loop body
LE: loop exit
PB: predicated region body
PF: predicated region fallthrough
CT: control target
= control target key end

     0   :  { %14 = vsyncpa [#allocation3], 0  ;;  %s1063_s0 = inlined_call_operand.hbm [shape: bf16[16,128], index: 0, kind: input, shape index: {}]   ;;  %s1064_s1 = inlined_call_operand.hbm [shape: bf16[128,128], index: 1, kind: input, shape index: {}]   ;;  %s1065_s2 = inlined_call_operand.vmem [shape: f32[1,128], index: 2, kind: input, shape index: {}]   ;;  %s1066_s3 = inlined_call_operand.hbm [shape: bf16[128,128], index: 3, kind: input, shape index: {}]   ;;  %s1067_s4 = inlined_call_operand.vmem [shape: f32[1,128], index: 4, kind: input, shape index: {}]   ;;  %s1068_s5 = inlined_call_operand.hbm [shape: bf16[128,128], index: 5, kind: input, shape index: {}]   ;;  %s1069_s6 = inlined_call_operand.vmem [shape: f32[1,128], index: 6, kind: input, shape index: {}]   ;;  %s1070_s7 = inlined_call_operand.hbm [shape: bf16[128,128], index: 7, kind: input, shape index: {}]   ;;  %s1071_s8 = inlined_call_operand.vmem [shape: f32[1,128], index: 8, kind: input, shape index: {}]   ;;  %s1072_s9 = inlined_call_operand.hbm [shape: f32[16,128], index: 9, kind: output, shape index: {}]  }
   0x1   :  { %15 = vsyncpa [#allocation6], 0 }
   0x2   :  { %16 = vsyncpa [#allocation9], 0 }
   0x3   :  { %17 = vsyncpa [#allocation4], 0  ;;  %s916_s30 = smov [#allocation5]   ;;  %s917_s11 = smov [#allocation8]  }
   0x4   :  { %s35_s10 = sshll.u32 %s916_s30, 4  ;;  %s63_s12 = sshll.u32 %s917_s11, 4  ;;  %s36_s10 = int_to_ptr.vmem [resolvable:$true] %s35_s10  ;;  %s64_s12 = int_to_ptr.vmem [resolvable:$true] %s63_s12 }
   0x5   :  { %s796_s13 = scalar_lea.vmem %s36_s10, 1024  ;;  %p801_p1 = scmp.lt.s32.totalorder %s36_s10, %s36_s10 }
   0x6   :  { %p797_p0 = scmp.ne.s32.totalorder %s36_s10, %s796_s13  ;;  %p802_p2 = scmp.lt.s32.totalorder %s796_s13, %s796_s13 }
   0x8   :  { %p803_p3 = por %p802_p2, %p801_p1 }
   0xa   :  { %p804_p4 = pnand %p803_p3, %p797_p0 }
   0xc   :  { %807 = shalt.err (!%p804_p4)
}
   0xd   :  { %s918_s14 = smov 64   ;;  %s919_s15 = smov 4  }
   0xe   :  { %41 = dma.hbm_to_vmem [thread:$0]  %s1064_s1, 1024, %s36_s10, [#allocation6], %s918_s14, %s918_s14, %s919_s15  }
   0xf   :  { %s816_s18 = scalar_lea.vmem %s64_s12, 1024  ;;  %p821_p6 = scmp.lt.s32.totalorder %s64_s12, %s64_s12 }
  0x10   :  { %p817_p5 = scmp.ne.s32.totalorder %s64_s12, %s816_s18  ;;  %p822_p7 = scmp.lt.s32.totalorder %s816_s18, %s816_s18 }
  0x12   :  { %p823_p8 = por %p822_p7, %p821_p6 }
  0x14   :  { %p824_p9 = pnand %p823_p8, %p817_p5 }
  0x16   :  { %827 = shalt.err (!%p824_p9)
}
  0x17   :  { %69 = dma.hbm_to_vmem [thread:$0]  %s1068_s5, 1024, %s64_s12, [#allocation9], %s918_s14, %s918_s14, %s919_s15  }
  0x18   :  { %s920_s21 = smov [#allocation2]   ;;  %s921_s23 = smov [#allocation7]  }
  0x19   :  { %s23_s22 = sshll.u32 %s920_s21, 4  ;;  %s49_s24 = sshll.u32 %s921_s23, 4  ;;  %s24_s22 = int_to_ptr.vmem [resolvable:$true] %s23_s22  ;;  %s50_s24 = int_to_ptr.vmem [resolvable:$true] %s49_s24 }
  0x1a   :  { %s836_s1 = scalar_lea.vmem %s24_s22, 128  ;;  %p841_p11 = scmp.lt.s32.totalorder %s24_s22, %s24_s22 }
  0x1b   :  { %p837_p10 = scmp.ne.s32.totalorder %s24_s22, %s836_s1  ;;  %p842_p12 = scmp.lt.s32.totalorder %s836_s1, %s836_s1 }
  0x1d   :  { %p843_p13 = por %p842_p12, %p841_p11 }
  0x1f   :  { %p844_p0 = pnand %p843_p13, %p837_p10 }
  0x21   :  { %847 = shalt.err (!%p844_p0)
}
  0x22   :  { %29 = dma.hbm_to_vmem [thread:$0]  %s1063_s0, 128, %s24_s22, [#allocation3], %s918_s14, %s918_s14, %s919_s15  }
  0x23   :  { %s856_s5 = scalar_lea.vmem %s50_s24, 1024  ;;  %p861_p2 = scmp.lt.s32.totalorder %s50_s24, %s50_s24 }
  0x24   :  { %p857_p1 = scmp.ne.s32.totalorder %s50_s24, %s856_s5  ;;  %p862_p3 = scmp.lt.s32.totalorder %s856_s5, %s856_s5 }
  0x26   :  { %p863_p4 = por %p862_p3, %p861_p2 }
  0x28   :  { %p864_p5 = pnand %p863_p4, %p857_p1 }
  0x2a   :  { %867 = shalt.err (!%p864_p5)
}
  0x2b   :  { %55 = dma.hbm_to_vmem [thread:$0]  %s1066_s3, 1024, %s50_s24, [#allocation6], %s918_s14, %s918_s14, %s919_s15  }
  0x2c   :  { %s922_s29 = smov [#allocation10]  }
  0x2d   :  { %s77_s30 = sshll.u32 %s922_s29, 4  ;;  %s78_s30 = int_to_ptr.vmem [resolvable:$true] %s77_s30 }
  0x2e   :  { %s876_s10 = scalar_lea.vmem %s78_s30, 1024  ;;  %p881_p7 = scmp.lt.s32.totalorder %s78_s30, %s78_s30 }
  0x2f   :  { %p877_p6 = scmp.ne.s32.totalorder %s78_s30, %s876_s10  ;;  %p882_p8 = scmp.lt.s32.totalorder %s876_s10, %s876_s10 }
  0x31   :  { %p883_p9 = por %p882_p8, %p881_p7 }
  0x33   :  { %p884_p10 = pnand %p883_p9, %p877_p6 }
  0x35   :  { %887 = shalt.err (!%p884_p10)
}
  0x36   :  { %83 = dma.hbm_to_vmem [thread:$0]  %s1070_s7, 1024, %s78_s30, [#allocation9], %s918_s14, %s918_s14, %s919_s15  }
  0x37   :  { %908 = dma.done.wait [#allocation3], 128  }
  0x38   :  { %909 = vsyncadd [#allocation3], 4294967168 }
  0x39   :  { %910 = dma.done.wait [#allocation6], 2048  }
  0x3a   :  { %911 = vsyncadd [#allocation6], 4294965248 }
  0x3b   :  { %912 = dma.done.wait [#allocation9], 2048  }
  0x3c   :  { %913 = vsyncadd [#allocation9], 4294965248  ;;  %v923_v0 = vmov 0.0   ;;  %vm924_vm0 = vmmov 0   ;;  %v755_v1 = vld [vmem:[#allocation5 + $0x38] sm:$0xff]   ;;  %v756_v2 = vld [vmem:[#allocation5 + $0x30] sm:$0xff]  }
  0x3d   :  { %663 = vmatprep.subr.bf16.mxu0 %v923_v0  ;;  %679 = vmatprep.mubr.msk.bf16.mxu0 %vm924_vm0, %v923_v0  ;;  %v757_v3 = vld [vmem:[#allocation5 + $0x28] sm:$0xff]   ;;  %v764_v4 = vld [vmem:[#allocation7 + $0x38] sm:$0xff]   ;;  %v758_v5 = vld [vmem:[#allocation5 + $0x20] sm:$0xff]   ;;  %s925_s16 = smov [#allocation11]  }
  0x3e   :  { %683 = vmatprep.subr.bf16.mxu1 %v923_v0  ;;  %699 = vmatprep.mubr.msk.bf16.mxu1 %vm924_vm0, %v923_v0  ;;  %v765_v6 = vld [vmem:[#allocation7 + $0x30] sm:$0xff]   ;;  %v759_v7 = vld [vmem:[#allocation5 + $0x18] sm:$0xff]   ;;  %v766_v8 = vld [vmem:[#allocation7 + $0x28] sm:$0xff]  }
  0x3f   :  { %664 = vmatpush3.bf16.msra.mxu0 %v755_v1  ;;  %684 = vmatpush3.bf16.msra.mxu1 %v764_v4  ;;  %v760_v9 = vld [vmem:[#allocation5 + $0x10] sm:$0xff]   ;;  %v767_v10 = vld [vmem:[#allocation7 + $0x20] sm:$0xff]   ;;  %v761_v11 = vld [vmem:[#allocation5 + $0x8] sm:$0xff]  }
  0x40   :  { %665 = vmatprep.subr.bf16.mxu0 %v923_v0  ;;  %685 = vmatprep.subr.bf16.mxu1 %v923_v0  ;;  %v768_v12 = vld [vmem:[#allocation7 + $0x18] sm:$0xff]   ;;  %v762_v13 = vld [vmem:[#allocation5] sm:$0xff]   ;;  %v769_v15 = vld [vmem:[#allocation7 + $0x10] sm:$0xff]  }
  0x41   :  { %v763_v14 = vld [vmem:[#allocation2] sm:$0xff]   ;;  %v770_v16 = vld [vmem:[#allocation7 + $0x8] sm:$0xff]   ;;  %v771_v17 = vld [vmem:[#allocation7] sm:$0xff]  }
  0x42   :  { %v772_v18 = vld [vmem:[#allocation8 + $0x38] sm:$0xff]   ;;  %v773_v19 = vld [vmem:[#allocation8 + $0x30] sm:$0xff]   ;;  %v774_v20 = vld [vmem:[#allocation8 + $0x28] sm:$0xff]  }
  0x43   :  { %666 = vmatpush3.bf16.msra.mxu0 %v756_v2  ;;  %686 = vmatpush3.bf16.msra.mxu1 %v765_v6  ;;  %v775_v21 = vld [vmem:[#allocation8 + $0x20] sm:$0xff]   ;;  %v776_v22 = vld [vmem:[#allocation8 + $0x18] sm:$0xff]   ;;  %v777_v33 = vld [vmem:[#allocation8 + $0x10] sm:$0xff]  }
  0x44   :  { %667 = vmatprep.subr.bf16.mxu0 %v923_v0  ;;  %687 = vmatprep.subr.bf16.mxu1 %v923_v0  ;;  %v590_v23 = vld [vmem:[%s1065_s2] ss:$0 sm:$0xff]  ;;  %v778_v34 = vld [vmem:[#allocation8 + $0x8] sm:$0xff]   ;;  %v779_v35 = vld [vmem:[#allocation8] sm:$0xff]  }
  0x45   :  { %v780_v36 = vld [vmem:[#allocation10 + $0x38] sm:$0xff]   ;;  %v781_v37 = vld [vmem:[#allocation10 + $0x30] sm:$0xff]   ;;  %v782_v38 = vld [vmem:[#allocation10 + $0x28] sm:$0xff]  }
  0x46   :  { %v783_v39 = vld [vmem:[#allocation10 + $0x20] sm:$0xff]   ;;  %v784_v40 = vld [vmem:[#allocation10 + $0x18] sm:$0xff]   ;;  %v785_v51 = vld [vmem:[#allocation10 + $0x10] sm:$0xff]  }
  0x47   :  { %668 = vmatpush3.bf16.msra.mxu0 %v757_v3  ;;  %688 = vmatpush3.bf16.msra.mxu1 %v766_v8  ;;  %v600_v41 = vld [vmem:[%s1067_s4] ss:$0 sm:$0xff]  ;;  %v786_v52 = vld [vmem:[#allocation10 + $0x8] sm:$0xff]   ;;  %v787_v53 = vld [vmem:[#allocation10] sm:$0xff]  }
  0x48   :  { %669 = vmatprep.subr.bf16.mxu0 %v923_v0  ;;  %689 = vmatprep.subr.bf16.mxu1 %v923_v0  ;;  %v609_v54 = vld [vmem:[%s1069_s6] ss:$0 sm:$0xff]  ;;  %s576_s6 = sshll.u32 %s925_s16, 4  ;;  %s577_s6 = int_to_ptr.vmem [resolvable:$true] %s576_s6 }
  0x49   :  { %s888_s17 = scalar_lea.vmem %s577_s6, 256  ;;  %p893_p12 = scmp.lt.s32.totalorder %s577_s6, %s577_s6 }
  0x4a   :  { %p889_p11 = scmp.ne.s32.totalorder %s577_s6, %s888_s17  ;;  %p894_p13 = scmp.lt.s32.totalorder %s888_s17, %s888_s17 }
  0x4b   :  { %670 = vmatpush3.bf16.msra.mxu0 %v758_v5  ;;  %690 = vmatpush3.bf16.msra.mxu1 %v767_v10 }
  0x4c   :  { %671 = vmatprep.subr.bf16.mxu0 %v923_v0  ;;  %691 = vmatprep.subr.bf16.mxu1 %v923_v0  ;;  %p895_p0 = por %p894_p13, %p893_p12 }
  0x4e   :  { %p896_p1 = pnand %p895_p0, %p889_p11 }
  0x4f   :  { %672 = vmatpush3.bf16.msra.mxu0 %v759_v7  ;;  %692 = vmatpush3.bf16.msra.mxu1 %v768_v12 }
  0x50   :  { %673 = vmatprep.subr.bf16.mxu0 %v923_v0  ;;  %693 = vmatprep.subr.bf16.mxu1 %v923_v0 }
  0x53   :  { %674 = vmatpush3.bf16.msra.mxu0 %v760_v9  ;;  %694 = vmatpush3.bf16.msra.mxu1 %v769_v15 }
  0x54   :  { %675 = vmatprep.subr.bf16.mxu0 %v923_v0  ;;  %695 = vmatprep.subr.bf16.mxu1 %v923_v0 }
  0x57   :  { %676 = vmatpush3.bf16.msra.mxu0 %v761_v11  ;;  %696 = vmatpush3.bf16.msra.mxu1 %v770_v16 }
  0x58   :  { %677 = vmatprep.subr.bf16.mxu0 %v923_v0  ;;  %697 = vmatprep.subr.bf16.mxu1 %v923_v0 }
  0x5b   :  { %678 = vmatpush3.bf16.msra.mxu0 %v762_v13  ;;  %698 = vmatpush3.bf16.msra.mxu1 %v771_v17 }
  0x5c   :  { %703 = vmatprep.subr.bf16.mxu0 %v923_v0  ;;  %723 = vmatprep.subr.bf16.mxu1 %v923_v0 }
  0x5e   :  { %680 = vmatmul.mubr.bf16.vlgmr.msra.gmra.mxu0 %v763_v14 }
  0x5f   :  { %719 = vmatprep.mubr.msk.bf16.mxu0 %vm924_vm0, %v923_v0  ;;  %704 = vmatpush3.bf16.msra.mxu0 %v772_v18 }
  0x60   :  { %705 = vmatprep.subr.bf16.mxu0 %v923_v0 }
  0x63   :  { %706 = vmatpush3.bf16.msra.mxu0 %v773_v19 }
  0x64   :  { %707 = vmatprep.subr.bf16.mxu0 %v923_v0 }
  0x67   :  { %708 = vmatpush3.bf16.msra.mxu0 %v774_v20 }
  0x68   :  { %709 = vmatprep.subr.bf16.mxu0 %v923_v0 }
  0x6b   :  { %710 = vmatpush3.bf16.msra.mxu0 %v775_v21 }
  0x6c   :  { %711 = vmatprep.subr.bf16.mxu0 %v923_v0 }
  0x6f   :  { %712 = vmatpush3.bf16.msra.mxu0 %v776_v22 }
  0x70   :  { %713 = vmatprep.subr.bf16.mxu0 %v923_v0 }
  0x73   :  { %714 = vmatpush3.bf16.msra.mxu0 %v777_v33 }
  0x74   :  { %715 = vmatprep.subr.bf16.mxu0 %v923_v0 }
  0x77   :  { %716 = vmatpush3.bf16.msra.mxu0 %v778_v34 }
  0x78   :  { %717 = vmatprep.subr.bf16.mxu0 %v923_v0 }
  0x7b   :  { %718 = vmatpush3.bf16.msra.mxu0 %v779_v35 }
 0x11e   :  { %v215_v24 = vpop.f32.mrf.mxu0 }
 0x11f   :  { %v216_v26 = vadd.f32 %v590_v23, %v215_v24 }
 0x120   :  { %v681_v25 = vpop.f32.mrf.mxu0 }
 0x121   :  { %v222_v30 = vmax.f32 %v216_v26, 0.0 }
 0x122   :  { %v218_v27 = vpop.f32.mrf.mxu0 }
 0x123   :  { %v219_v28 = vadd.f32 %v590_v23, %v218_v27 }
 0x124   :  { %v682_v29 = vpop.f32.mrf.mxu0 }
 0x125   :  { %v223_v31 = vmax.f32 %v219_v28, 0.0 }
 0x127   :  { %v224_v32 = vpack.c.bf16 %v223_v31, %v222_v30 }
 0x129   :  { %700 = vmatmul.mubr.bf16.vlgmr.msra.gmra.mxu1 %v224_v32 }
 0x12a   :  { %739 = vmatprep.mubr.msk.bf16.mxu1 %vm924_vm0, %v923_v0  ;;  %724 = vmatpush3.bf16.msra.mxu1 %v780_v36 }
 0x12b   :  { %725 = vmatprep.subr.bf16.mxu1 %v923_v0 }
 0x12e   :  { %726 = vmatpush3.bf16.msra.mxu1 %v781_v37 }
 0x12f   :  { %727 = vmatprep.subr.bf16.mxu1 %v923_v0 }
 0x132   :  { %728 = vmatpush3.bf16.msra.mxu1 %v782_v38 }
 0x133   :  { %729 = vmatprep.subr.bf16.mxu1 %v923_v0 }
 0x136   :  { %730 = vmatpush3.bf16.msra.mxu1 %v783_v39 }
 0x137   :  { %731 = vmatprep.subr.bf16.mxu1 %v923_v0 }
 0x13a   :  { %732 = vmatpush3.bf16.msra.mxu1 %v784_v40 }
 0x13b   :  { %733 = vmatprep.subr.bf16.mxu1 %v923_v0 }
 0x13e   :  { %734 = vmatpush3.bf16.msra.mxu1 %v785_v51 }
 0x13f   :  { %735 = vmatprep.subr.bf16.mxu1 %v923_v0 }
 0x142   :  { %736 = vmatpush3.bf16.msra.mxu1 %v786_v52 }
 0x143   :  { %737 = vmatprep.subr.bf16.mxu1 %v923_v0  ;;  %v618_v0 = vld [vmem:[%s1071_s8] ss:$0 sm:$0xff] }
 0x146   :  { %738 = vmatpush3.bf16.msra.mxu1 %v787_v53 }
 0x1e9   :  { %v330_v42 = vpop.f32.mrf.mxu1 }
 0x1ea   :  { %v331_v44 = vadd.f32 %v600_v41, %v330_v42 }
 0x1eb   :  { %v701_v43 = vpop.f32.mrf.mxu1 }
 0x1ec   :  { %v337_v48 = vmax.f32 %v331_v44, 0.0 }
 0x1ed   :  { %v333_v45 = vpop.f32.mrf.mxu1 }
 0x1ee   :  { %v334_v46 = vadd.f32 %v600_v41, %v333_v45 }
 0x1ef   :  { %v702_v47 = vpop.f32.mrf.mxu1 }
 0x1f0   :  { %v338_v49 = vmax.f32 %v334_v46, 0.0 }
 0x1f2   :  { %v339_v50 = vpack.c.bf16 %v338_v49, %v337_v48 }
 0x1f4   :  { %720 = vmatmul.mubr.bf16.vlgmr.msra.gmra.mxu0 %v339_v50 }
 0x2b4   :  { %v445_v55 = vpop.f32.mrf.mxu0 }
 0x2b5   :  { %v446_v57 = vadd.f32 %v609_v54, %v445_v55 }
 0x2b6   :  { %v721_v56 = vpop.f32.mrf.mxu0 }
 0x2b7   :  { %v452_v61 = vmax.f32 %v446_v57, 0.0 }
 0x2b8   :  { %v448_v58 = vpop.f32.mrf.mxu0 }
 0x2b9   :  { %v449_v59 = vadd.f32 %v609_v54, %v448_v58 }
 0x2ba   :  { %v722_v60 = vpop.f32.mrf.mxu0 }
 0x2bb   :  { %v453_v62 = vmax.f32 %v449_v59, 0.0 }
 0x2bd   :  { %v454_v63 = vpack.c.bf16 %v453_v62, %v452_v61 }
 0x2bf   :  { %740 = vmatmul.mubr.bf16.vlgmr.msra.gmra.mxu1 %v454_v63 }
 0x37f   :  { %v560_v1 = vpop.f32.mrf.mxu1 }
 0x380   :  { %v561_v2 = vadd.f32 %v618_v0, %v560_v1 }
 0x381   :  { %v741_v3 = vpop.f32.mrf.mxu1 }
 0x382   :  { %v567_v4 = vmax.f32 %v561_v2, 0.0 }
 0x383   :  { %v563_v5 = vpop.f32.mrf.mxu1 }
 0x384   :  { %569 = vst [vmem:[#allocation11] sm:$0xff] %v567_v4  ;;  %v564_v6 = vadd.f32 %v618_v0, %v563_v5 }
 0x385   :  { %v742_v7 = vpop.f32.mrf.mxu1 }
 0x386   :  { %v568_v8 = vmax.f32 %v564_v6, 0.0 }
 0x388   :  { %570 = vst [vmem:[#allocation11 + $0x8] sm:$0xff] %v568_v8 }
 0x389   :  { %899 = shalt.err (!%p896_p1)
}
 0x38a   :  { %s926_s8 = smov 128   ;;  %s927_s18 = smov 8  }
 0x38b   :  { %582 = dma.vmem_to_hbm [thread:$0]  %s577_s6, 256, %s1072_s9, [#allocation4], %s926_s8, %s926_s8, %s927_s18  }
 0x38c   :  { %914 = dma.done.wait [#allocation4], 256  }
 0x38d   :  { %915 = vsyncadd [#allocation4], 4294967040 }
 0x38e   :  { %586 = vsyncpa [#allocation3], 1 }
 0x38f   :  { %587 = vsyncpa [#allocation6], 1 }
 0x390   :  { %588 = vsyncpa [#allocation9], 1 }
 0x391   :  { %589 = vsyncpa [#allocation4], 1 }

</bundles_post_ra>
